<compile_context>
chip_gen: v7x
topology: tpu7x:2x2x1
jax: 0.10.0
libtpu: 0.0.40
codegen_flags: <defaults>
</compile_context>

<pallas_src>
import jax
import jax.numpy as jnp
from jax.experimental import pallas as pl
from jax.experimental.pallas import tpu as pltpu


# --------------------------------------------------------------------------
# Kernels
# --------------------------------------------------------------------------
def _make_norm_kernel(eps, affine, subtract_last, non_norm):
    """Fused statistics + normalize (+ optional affine) kernel."""

    def compute(x_ref, xo_ref, loc_ref, std_ref, w=None, b=None):
        xf = x_ref[...].astype(jnp.float32)                  # (1, L, TN)
        mean = jnp.mean(xf, axis=1, keepdims=True)           # (1, 1, TN)
        diff = xf - mean
        var = jnp.mean(diff * diff, axis=1, keepdims=True)   # unbiased=False
        std = jnp.sqrt(var + eps)                            # (1, 1, TN)
        loc = xf[:, -1:, :] if subtract_last else mean       # (1, 1, TN)
        if non_norm:
            y = xf
        else:
            y = (xf - loc) * (1.0 / std)
            if affine:
                y = y * w + b
        xo_ref[...] = y.astype(xo_ref.dtype)
        loc_ref[...] = loc.astype(loc_ref.dtype)
        std_ref[...] = std.astype(std_ref.dtype)

    if affine:
        def kernel(x_ref, w_ref, b_ref, xo_ref, loc_ref, std_ref):
            compute(x_ref, xo_ref, loc_ref, std_ref,
                    w=w_ref[...].astype(jnp.float32),
                    b=b_ref[...].astype(jnp.float32))
    else:
        def kernel(x_ref, xo_ref, loc_ref, std_ref):
            compute(x_ref, xo_ref, loc_ref, std_ref)
    return kernel


def _make_denorm_kernel(eps, affine):
    """Inverse transform kernel: undo affine, re-scale, re-shift."""

    if affine:
        def kernel(x_ref, loc_ref, std_ref, w_ref, b_ref, xo_ref):
            xf = x_ref[...].astype(jnp.float32)               # (1, L, TN)
            w = w_ref[...].astype(jnp.float32)                # (1, 1, TN)
            b = b_ref[...].astype(jnp.float32)
            xf = (xf - b) * (1.0 / (w + eps * eps))
            y = xf * std_ref[...].astype(jnp.float32) + loc_ref[...].astype(jnp.float32)
            xo_ref[...] = y.astype(xo_ref.dtype)
    else:
        def kernel(x_ref, loc_ref, std_ref, xo_ref):
            xf = x_ref[...].astype(jnp.float32)
            y = xf * std_ref[...].astype(jnp.float32) + loc_ref[...].astype(jnp.float32)
            xo_ref[...] = y.astype(xo_ref.dtype)
    return kernel


# --------------------------------------------------------------------------
# Wrappers
# --------------------------------------------------------------------------
def _feature_tile(n, block_n=512):
    # Full dim (no (8,128) constraint) for small N, otherwise a lane-dense
    # multiple of 128 so stores are unmasked vst.
    if n <= block_n:
        return n
    return max(128, (block_n // 128) * 128)


def revin_normalize(x, weight=None, bias=None, *, eps=1e-5, affine=False,
                    subtract_last=False, non_norm=False, block_n=512):
    """mode='norm': returns (y, loc, stdev) with loc/stdev of shape [B,1,N]."""
    B, L, N = x.shape
    tn = _feature_tile(N, block_n)
    grid = (B, pl.cdiv(N, tn))

    x_spec = pl.BlockSpec((1, L, tn), lambda b, j: (b, 0, j))
    stat_spec = pl.BlockSpec((1, 1, tn), lambda b, j: (b, 0, j))
    vec_spec = pl.BlockSpec((1, 1, tn), lambda b, j: (0, 0, j))

    in_specs = [x_spec]
    args = [x]
    if affine:
        assert weight is not None and bias is not None
        in_specs += [vec_spec, vec_spec]
        args += [weight.reshape(1, 1, N).astype(jnp.float32),
                 bias.reshape(1, 1, N).astype(jnp.float32)]

    out_shape = (jax.ShapeDtypeStruct((B, L, N), x.dtype),      # normalized x
                 jax.ShapeDtypeStruct((B, 1, N), jnp.float32),   # loc (mean/last)
                 jax.ShapeDtypeStruct((B, 1, N), jnp.float32))   # stdev
    out_specs = (x_spec, stat_spec, stat_spec)

    itemsize = jnp.dtype(x.dtype).itemsize
    cost = pl.CostEstimate(
        flops=6 * B * L * N,
        transcendentals=B * N,
        bytes_accessed=2 * B * L * N * itemsize + 2 * B * N * 4
                       + (2 * N * 4 if affine else 0),
    )

    y, loc, std = pl.pallas_call(
        _make_norm_kernel(eps, affine, subtract_last, non_norm),
        out_shape=out_shape,
        grid=grid,
        in_specs=in_specs,
        out_specs=out_specs,
        compiler_params=pltpu.CompilerParams(
            dimension_semantics=("parallel", "parallel")),
        cost_estimate=cost,
    )(*args)
    return y, loc, std


def revin_denormalize(x, loc, std, weight=None, bias=None, *, eps=1e-5,
                      affine=False, non_norm=False, block_n=512):
    """mode='denorm': inverse transform using previously computed loc/stdev."""
    if non_norm:
        return x
    B, L, N = x.shape
    tn = _feature_tile(N, block_n)
    grid = (B, pl.cdiv(N, tn))

    x_spec = pl.BlockSpec((1, L, tn), lambda b, j: (b, 0, j))
    stat_spec = pl.BlockSpec((1, 1, tn), lambda b, j: (b, 0, j))
    vec_spec = pl.BlockSpec((1, 1, tn), lambda b, j: (0, 0, j))

    in_specs = [x_spec, stat_spec, stat_spec]
    args = [x, loc, std]
    if affine:
        assert weight is not None and bias is not None
        in_specs += [vec_spec, vec_spec]
        args += [weight.reshape(1, 1, N).astype(jnp.float32),
                 bias.reshape(1, 1, N).astype(jnp.float32)]

    itemsize = jnp.dtype(x.dtype).itemsize
    cost = pl.CostEstimate(
        flops=4 * B * L * N,
        transcendentals=0,
        bytes_accessed=2 * B * L * N * itemsize + 2 * B * N * 4,
    )

    return pl.pallas_call(
        _make_denorm_kernel(eps, affine),
        out_shape=jax.ShapeDtypeStruct((B, L, N), x.dtype),
        grid=grid,
        in_specs=in_specs,
        out_specs=x_spec,
        compiler_params=pltpu.CompilerParams(
            dimension_semantics=("parallel", "parallel")),
        cost_estimate=cost,
    )(*args)


class Normalize:
    """JAX/Pallas port of TimeMixer's Normalize (RevIN) module (forward only).

    Statistics computed in 'norm' mode are held on the object (like the torch
    module's self.mean / self.last / self.stdev) and reused in 'denorm'.
    """

    def __init__(self, num_features, eps=1e-5, affine=False,
                 subtract_last=False, non_norm=False):
        self.num_features = num_features
        self.eps = eps
        self.affine = affine
        self.subtract_last = subtract_last
        self.non_norm = non_norm
        if affine:
            self.affine_weight = jnp.ones((num_features,), jnp.float32)
            self.affine_bias = jnp.zeros((num_features,), jnp.float32)
        else:
            self.affine_weight = None
            self.affine_bias = None
        self._loc = None   # mean (or last timestep if subtract_last), [B,1,N]
        self._std = None   # stdev, [B,1,N]

    def forward(self, x, mode):
        if mode == 'norm':
            y, self._loc, self._std = revin_normalize(
                x, self.affine_weight, self.affine_bias, eps=self.eps,
                affine=self.affine, subtract_last=self.subtract_last,
                non_norm=self.non_norm)
            return y
        elif mode == 'denorm':
            assert self._loc is not None, "run forward(x, 'norm') first"
            return revin_denormalize(
                x, self._loc, self._std, self.affine_weight, self.affine_bias,
                eps=self.eps, affine=self.affine, non_norm=self.non_norm)
        else:
            raise NotImplementedError(mode)

    __call__ = forward


# --------------------------------------------------------------------------
# Pure-JAX references
# --------------------------------------------------------------------------
def _ref_norm(x, w, b, eps, affine, subtract_last, non_norm):
    mean = jnp.mean(x, axis=1, keepdims=True)
    std = jnp.sqrt(jnp.var(x, axis=1, keepdims=True) + eps)
    loc = x[:, -1:, :] if subtract_last else mean
    if non_norm:
        return x, loc, std
    y = (x - loc) / std
    if affine:
        y = y * w + b
    return y, loc, std


def _ref_denorm(x, loc, std, w, b, eps, affine):
    if affine:
        x = (x - b) / (w + eps * eps)
    return x * std + loc


# --------------------------------------------------------------------------
# Test
# --------------------------------------------------------------------------
if __name__ == "__main__":
    B, L, N = 2, 16, 8   # small shapes: batch=2, seq_len=16, num_features=8
    eps = 1e-5

    key = jax.random.PRNGKey(0)
    kx, kw, kb = jax.random.split(key, 3)
    x = 0.5 + 2.0 * jax.random.normal(kx, (B, L, N), dtype=jnp.float32)

    # ---- Case 1: affine RevIN, subtract mean ------------------------------
    m1 = Normalize(N, eps=eps, affine=True, subtract_last=False)
    m1.affine_weight = 1.0 + 0.1 * jax.random.normal(kw, (N,), jnp.float32)
    m1.affine_bias = 0.1 * jax.random.normal(kb, (N,), jnp.float32)

    y1 = jax.block_until_ready(m1(x, 'norm'))
    y1_ref, loc1_ref, std1_ref = _ref_norm(
        x, m1.affine_weight, m1.affine_bias, eps, True, False, False)
    assert y1.shape == (B, L, N), y1.shape
    assert jnp.allclose(y1, y1_ref, atol=1e-4, rtol=1e-4), "norm mismatch"
    assert jnp.allclose(m1._loc, loc1_ref, atol=1e-4, rtol=1e-4), "mean mismatch"
    assert jnp.allclose(m1._std, std1_ref, atol=1e-4, rtol=1e-4), "stdev mismatch"

    z1 = jax.block_until_ready(m1(y1, 'denorm'))
    z1_ref = _ref_denorm(y1_ref, loc1_ref, std1_ref,
                         m1.affine_weight, m1.affine_bias, eps, True)
    assert jnp.allclose(z1, z1_ref, atol=1e-4, rtol=1e-4), "denorm mismatch"
    assert jnp.allclose(z1, x, atol=1e-3, rtol=1e-3), "round-trip mismatch"

    # ---- Case 2: subtract_last, no affine ---------------------------------
    m2 = Normalize(N, eps=eps, affine=False, subtract_last=True)
    y2 = jax.block_until_ready(m2(x, 'norm'))
    y2_ref, loc2_ref, std2_ref = _ref_norm(x, None, None, eps, False, True, False)
    assert jnp.allclose(y2, y2_ref, atol=1e-4, rtol=1e-4), "norm (last) mismatch"
    assert jnp.allclose(m2._loc, loc2_ref, atol=1e-4, rtol=1e-4), "last mismatch"

    z2 = jax.block_until_ready(m2(y2, 'denorm'))
    z2_ref = _ref_denorm(y2_ref, loc2_ref, std2_ref, None, None, eps, False)
    assert jnp.allclose(z2, z2_ref, atol=1e-4, rtol=1e-4), "denorm (last) mismatch"

    # TODO(synk): torch-style in-place module state (self.mean/self.stdev as
    # buffers on a stateful nn.Module) has no Pallas equivalent; statistics
    # are returned functionally and cached on the Python wrapper instead.
    print("KERNEL_OK")
</pallas_src>

<mosaic_0001>
module attributes {stable_mosaic.version = 11 : i64} {
  func.func @kernel(%arg0: i32, %arg1: i32, %arg2: memref<1x16x8xf32, #tpu.memory_space<vmem>>, %arg3: memref<1x1x8xf32, #tpu.memory_space<vmem>>, %arg4: memref<1x1x8xf32, #tpu.memory_space<vmem>>, %arg5: memref<1x16x8xf32, #tpu.memory_space<vmem>>, %arg6: memref<1x1x8xf32, #tpu.memory_space<vmem>>, %arg7: memref<1x1x8xf32, #tpu.memory_space<vmem>>) attributes {dimension_semantics = [#tpu.dimension_semantics<parallel>, #tpu.dimension_semantics<parallel>], iteration_bounds = array<i64: 2, 1>, scalar_prefetch = 0 : i64, scratch_operands = 0 : i64, tpu.core_type = #tpu.core_type<tc>, window_params = [{transform_indices = @transform_0, window_bounds = array<i64: 1, 16, 8>}, {transform_indices = @transform_1, window_bounds = array<i64: 1, 1, 8>}, {transform_indices = @transform_2, window_bounds = array<i64: 1, 1, 8>}, {transform_indices = @transform_3, window_bounds = array<i64: 1, 16, 8>}, {transform_indices = @transform_4, window_bounds = array<i64: 1, 1, 8>}, {transform_indices = @transform_5, window_bounds = array<i64: 1, 1, 8>}]} {
    %c0 = arith.constant 0 : index
    %c0_0 = arith.constant 0 : index
    %c0_1 = arith.constant 0 : index
    %0 = vector.load %arg3[%c0, %c0_0, %c0_1] : memref<1x1x8xf32, #tpu.memory_space<vmem>>, vector<1x1x8xf32>
    %c0_2 = arith.constant 0 : index
    %c0_3 = arith.constant 0 : index
    %c0_4 = arith.constant 0 : index
    %1 = vector.load %arg4[%c0_2, %c0_3, %c0_4] : memref<1x1x8xf32, #tpu.memory_space<vmem>>, vector<1x1x8xf32>
    %c0_5 = arith.constant 0 : index
    %c0_6 = arith.constant 0 : index
    %c0_7 = arith.constant 0 : index
    %2 = vector.load %arg2[%c0_5, %c0_6, %c0_7] : memref<1x16x8xf32, #tpu.memory_space<vmem>>, vector<1x16x8xf32>
    %cst = arith.constant dense<0.000000e+00> : vector<1x8xf32>
    %3 = vector.multi_reduction <add>, %2, %cst [1] : vector<1x16x8xf32> to vector<1x8xf32>
    %4 = vector.shape_cast %3 : vector<1x8xf32> to vector<1x1x8xf32>
    %cst_8 = arith.constant 1.600000e+01 : f32
    %5 = vector.broadcast %cst_8 : f32 to vector<1x1x8xf32>
    %6 = arith.divf %4, %5 : vector<1x1x8xf32>
    %7 = vector.broadcast %6 : vector<1x1x8xf32> to vector<1x16x8xf32>
    %8 = arith.subf %2, %7 : vector<1x16x8xf32>
    %9 = arith.mulf %8, %8 : vector<1x16x8xf32>
    %cst_9 = arith.constant dense<0.000000e+00> : vector<1x8xf32>
    %10 = vector.multi_reduction <add>, %9, %cst_9 [1] : vector<1x16x8xf32> to vector<1x8xf32>
    %11 = vector.shape_cast %10 : vector<1x8xf32> to vector<1x1x8xf32>
    %cst_10 = arith.constant 1.600000e+01 : f32
    %12 = vector.broadcast %cst_10 : f32 to vector<1x1x8xf32>
    %13 = arith.divf %11, %12 : vector<1x1x8xf32>
    %cst_11 = arith.constant 9.99999974E-6 : f32
    %14 = vector.broadcast %cst_11 : f32 to vector<1x1x8xf32>
    %15 = arith.addf %13, %14 : vector<1x1x8xf32>
    %16 = math.sqrt %15 : vector<1x1x8xf32>
    %17 = vector.broadcast %6 : vector<1x1x8xf32> to vector<1x16x8xf32>
    %18 = arith.subf %2, %17 : vector<1x16x8xf32>
    %cst_12 = arith.constant 1.000000e+00 : f32
    %19 = vector.broadcast %cst_12 : f32 to vector<1x1x8xf32>
    %20 = arith.divf %19, %16 : vector<1x1x8xf32>
    %21 = vector.broadcast %20 : vector<1x1x8xf32> to vector<1x16x8xf32>
    %22 = arith.mulf %18, %21 : vector<1x16x8xf32>
    %23 = vector.broadcast %0 : vector<1x1x8xf32> to vector<1x16x8xf32>
    %24 = arith.mulf %22, %23 : vector<1x16x8xf32>
    %25 = vector.broadcast %1 : vector<1x1x8xf32> to vector<1x16x8xf32>
    %26 = arith.addf %24, %25 : vector<1x16x8xf32>
    %c0_13 = arith.constant 0 : index
    %c0_14 = arith.constant 0 : index
    %c0_15 = arith.constant 0 : index
    %27 = vector.load %arg5[%c0_13, %c0_14, %c0_15] : memref<1x16x8xf32, #tpu.memory_space<vmem>>, vector<1x16x8xf32>
    tpu.vector_store %arg5[%c0_13, %c0_14, %c0_15], %26 {strides = array<i32>} : memref<1x16x8xf32, #tpu.memory_space<vmem>>, vector<1x16x8xf32>,
    %c0_16 = arith.constant 0 : index
    %c0_17 = arith.constant 0 : index
    %c0_18 = arith.constant 0 : index
    %28 = vector.load %arg6[%c0_16, %c0_17, %c0_18] : memref<1x1x8xf32, #tpu.memory_space<vmem>>, vector<1x1x8xf32>
    tpu.vector_store %arg6[%c0_16, %c0_17, %c0_18], %6 {strides = array<i32>} : memref<1x1x8xf32, #tpu.memory_space<vmem>>, vector<1x1x8xf32>,
    %c0_19 = arith.constant 0 : index
    %c0_20 = arith.constant 0 : index
    %c0_21 = arith.constant 0 : index
    %29 = vector.load %arg7[%c0_19, %c0_20, %c0_21] : memref<1x1x8xf32, #tpu.memory_space<vmem>>, vector<1x1x8xf32>
    tpu.vector_store %arg7[%c0_19, %c0_20, %c0_21], %16 {strides = array<i32>} : memref<1x1x8xf32, #tpu.memory_space<vmem>>, vector<1x1x8xf32>,
    return
  }
  func.func @transform_0(%arg0: i32, %arg1: i32) -> (i32, i32, i32) {
    %c0_i32 = arith.constant 0 : i32
    %c0_i32_0 = arith.constant 0 : i32
    return %arg0, %c0_i32, %arg1 : i32, i32, i32
  }
  func.func @transform_1(%arg0: i32, %arg1: i32) -> (i32, i32, i32) {
    %c0_i32 = arith.constant 0 : i32
    %c0_i32_0 = arith.constant 0 : i32
    %c0_i32_1 = arith.constant 0 : i32
    return %c0_i32, %c0_i32_0, %arg1 : i32, i32, i32
  }
  func.func @transform_2(%arg0: i32, %arg1: i32) -> (i32, i32, i32) {
    %c0_i32 = arith.constant 0 : i32
    %c0_i32_0 = arith.constant 0 : i32
    %c0_i32_1 = arith.constant 0 : i32
    return %c0_i32, %c0_i32_0, %arg1 : i32, i32, i32
  }
  func.func @transform_3(%arg0: i32, %arg1: i32) -> (i32, i32, i32) {
    %c0_i32 = arith.constant 0 : i32
    %c0_i32_0 = arith.constant 0 : i32
    return %arg0, %c0_i32, %arg1 : i32, i32, i32
  }
  func.func @transform_4(%arg0: i32, %arg1: i32) -> (i32, i32, i32) {
    %c0_i32 = arith.constant 0 : i32
    %c0_i32_0 = arith.constant 0 : i32
    return %arg0, %c0_i32, %arg1 : i32, i32, i32
  }
  func.func @transform_5(%arg0: i32, %arg1: i32) -> (i32, i32, i32) {
    %c0_i32 = arith.constant 0 : i32
    %c0_i32_0 = arith.constant 0 : i32
    return %arg0, %c0_i32, %arg1 : i32, i32, i32
  }
}

</mosaic_0001>

<bundles_post_ra>
// kernel: tpu_custom_call.1
= control target key start
LH: loop header
LB: loop body
LE: loop exit
PB: predicated region body
PF: predicated region fallthrough
CT: control target
= control target key end

     0   :  { %11 = vsyncpa [#allocation3], 0  ;;  %s983_s0 = inlined_call_operand.vmem [shape: f32[2,16,8], index: 0, kind: input, shape index: {}]   ;;  %s984_s1 = inlined_call_operand.vmem [shape: f32[1,1,8], index: 1, kind: input, shape index: {}]   ;;  %s985_s2 = inlined_call_operand.vmem [shape: f32[1,1,8], index: 2, kind: input, shape index: {}]   ;;  %s986_s3 = inlined_call_operand.vmem [shape: f32[2,16,8], index: 3, kind: output, shape index: {0}]   ;;  %s987_s4 = inlined_call_operand.hbm [shape: f32[2,1,8], index: 4, kind: output, shape index: {1}]   ;;  %s988_s5 = inlined_call_operand.hbm [shape: f32[2,1,8], index: 5, kind: output, shape index: {2}]  }
   0x1   :  { %13 = vsyncpa [#allocation3 + $0x1], 0 }
   0x2   :  { %14 = vsyncpa [#allocation5], 0 }
   0x3   :  { %16 = vsyncpa [#allocation5 + $0x1], 0  ;;  %s799_s18 = smov 0   ;;  %s801_s19 = smov 0  }
   0x4   :  { %s803_s20 = smov 0   ;;  %s805_s21 = smov 0  }
   0x5   :  { %s807_s22 = smov 0   ;;  %s809_s23 = smov 0  }
   0x6 LB: > { %s572_s24 = sadd.s32 4294967295, %s765_s23   ;;  %s573_s25 = sadd.s32 4294967294, %s765_s23   ;;  %s765_s23 = sphi %s809_s23, %s22_s23   ;;  %s761_s22 = sphi %s807_s22, %s995_s22   ;;  %s757_s21 = sphi %s805_s21, %s994_s21   ;;  %s753_s20 = sphi %s803_s20, %s993_s20   ;;  %s749_s19 = sphi %s801_s19, %s992_s19   ;;  %s745_s18 = sphi %s799_s18, %s991_s18  }
   0x7   : > { %s34_s26 = sadd.s32 1, %s761_s22  ;;  %s151_s27 = sadd.s32 1, %s753_s20 }
   0x8   : > { %p36_p0 = scmp.ge.s32.totalorder %s34_s26, 2  ;;  %p161_p1 = scmp.ne.s32.totalorder %s753_s20, %s749_s19 }
   0x9   : > { %p162_p2 = scmp.eq.s32.totalorder %s572_s24, 1  ;;  %p167_p3 = scmp.ne.s32.totalorder %s749_s19, %s745_s18 }
   0xa   : > { %s997_s26 = smov (%p36_p0, %s34_s26), 0  ;;  %p168_p5 = scmp.eq.s32.totalorder %s573_s25, 1 }
   0xb   : > { %p839_p4 = por %p162_p2, %p161_p1  ;;  %s146_s29 = ssub.s32 %s761_s22, %s997_s26 }
   0xc   : > { %p578_p6 = scmp.ge.s32.totalorder %s765_s23, 1  ;;  %p149_p7 = scmp.eq.s32.totalorder %s146_s29, 0 }
   0xd   : > { %p846_p8 = por %p168_p5, %p167_p3  ;;  %p237_p9 = scmp.lt.s32.totalorder %s765_s23, 3 }
   0xe   : > { %s852_s6 = scalar_select %p149_p7, %s753_s20, %s151_s27  }
   0xf   : > { %p238_p10 = pnand %p578_p6, %p237_p9 }
  0x10   : > { %p285_p11 = scmp.lt.s32.totalorder (!%p238_p10), %s757_s21, 1  ;;  %vm311_vm0 = vcmask (!%p238_p10), 64512   ;;  %s867_s12 = sand.u32 (!%p238_p10), 1, %s749_s19   ;;  %vm367_vm1 = vcmask (!%p238_p10), 57344  }
  0x11   : > { %241 = sbr.rel (%p238_p10) target bundleno = 116 (0x74), region = 32  ;;  %s278_s13 = scalar_lea.vmem (!%p238_p10), [#allocation2], %s867_s12 }
  0x12   : > { %s399_s14 = sshll.u32 (!%p238_p10), %s278_s13, 4  ;;  %s585_s15 = sshll.u32 (!%p238_p10), %s757_s21, 4  ;;  %s871_s14 = int_to_ptr.vmem [resolvable:$true] %s399_s14 }
  0x13   : > { %s878_s24 = scalar_lea.hbm (!%p238_p10), %s987_s4, %s585_s15  ;;  %s379_s25 = scalar_lea.sflag (!%p238_p10), [#allocation3], %s867_s12 }
  0x14   : > { %s655_s27 = scalar_lea.vmem (!%p238_p10), %s871_s14, 16  ;;  %s767_s29 = smov (!%p238_p10), [#allocation2]  }
  0x15   : > { %p656_p12 = scmp.ne.s32.totalorder (!%p238_p10), %s871_s14, %s655_s27  ;;  %s659_s9 = sshll.u32 (!%p238_p10), %s767_s29, 4  ;;  %s660_s9 = int_to_ptr.vmem [resolvable:$false] %s659_s9 }
  0x16   : > { %s661_s10 = scalar_lea.vmem (!%p238_p10), %s660_s9, 32  ;;  %p662_p1 = scmp.lt.s32.totalorder (!%p238_p10), %s871_s14, %s660_s9 }
  0x17   : > { %p657_p13 = pnand (!%p238_p10), %p656_p12, %p839_p4  ;;  %p663_p2 = scmp.lt.s32.totalorder (!%p238_p10), %s661_s10, %s655_s27 }
  0x18   : > { %s856_s7 = scalar_select %p285_p11, %s757_s21, 1 }
  0x19   : > { %p658_p0 = pneg %p657_p13  ;;  %p664_p3 = por %p663_p2, %p662_p1 }
  0x1a   : > { %s589_s8 = sshll.u32 %s856_s7, 4 }
  0x1b   : > { %s292_s11 = scalar_lea.vmem %s983_s0, %s589_s8  ;;  %p665_p5 = pnand %p664_p3, %p658_p0 }
  0x1c   : > { %v309_v0 = vld [vmem:[%s292_s11] sm:$0xff]  ;;  %v310_v1 = vld [vmem:[%s292_s11 + $0x8] sm:$0xff] }
  0x1d   : > { %v312_v2 = vsel %vm311_vm0, %v309_v0, 0.0  ;;  %v313_v3 = vsel %vm311_vm0, %v310_v1, 0.0 }
  0x1e   : > { %v314_v4 = vadd.f32 %v313_v3, %v312_v2 }
  0x20   : > { %v315_v5 = vrot.slane %v314_v4, 4 }
  0x22   : > { %v316_v6 = vadd.f32 %v315_v5, %v314_v4 }
  0x24   : > { %v317_v7 = vrot.slane %v316_v6, 2 }
  0x26   : > { %v318_v8 = vadd.f32 %v317_v7, %v316_v6 }
  0x28   : > { %v319_v9 = vrot.slane %v318_v8, 1 }
  0x2a   : > { %v320_v10 = vadd.f32 %v319_v9, %v318_v8 }
  0x2c   : > { %v322_v11 = vmul.f32 0.0625, %v320_v10 }
  0x2e   : > { %v880_v12 = vsub.f32 %v309_v0, %v322_v11  ;;  %v882_v13 = vsub.f32 %v310_v1, %v322_v11  ;;  %368 = vst.msk [vmem:[%s278_s13] sm:$0x1] %vm367_vm1, %v322_v11 }
  0x2f   : > { %668 = shalt.err (!%p665_p5)
}
  0x30   : > { %s669_s11 = scalar_lea.hbm %s878_s24, 16  ;;  %s673_s17 = scalar_lea.hbm %s987_s4, 32 }
  0x31   : > { %p670_p6 = scmp.ne.s32.totalorder %s878_s24, %s669_s11  ;;  %p674_p10 = scmp.lt.u32.totalorder %s878_s24, %s987_s4 }
  0x32   : > { %p675_p11 = scmp.lt.u32.totalorder %s673_s17, %s669_s11  ;;  %p677_p13 = scmp.lt.u32.totalorder %s669_s11, %s878_s24 }
  0x33   : > { %p671_p7 = pnand %p670_p6, %p839_p4 }
  0x34   : > { %p676_p12 = por %p675_p11, %p674_p10 }
  0x35   : > { %p672_p9 = pneg %p671_p7 }
  0x36   : > { %p678_p0 = por %p677_p13, %p676_p12 }
  0x38   : > { %p679_p1 = pnand %p678_p0, %p672_p9 }
  0x3a   : > { %682 = shalt.err (!%p679_p1)
}
  0x3b   : > { %591 = dma.vmem_to_hbm [thread:$0]  (%p839_p4), %s871_s14, 16, %s878_s24, %s379_s25   ;;  %v325_v14 = vmul.f32 %v880_v12, %v880_v12  ;;  %v326_v15 = vmul.f32 %v882_v13, %v882_v13 }
  0x3c   : > { %s284_s14 = scalar_lea.vmem [#allocation4], %s867_s12  ;;  %s921_s10 = scalar_lea.hbm %s988_s5, %s585_s15 }
  0x3d   : > { %v327_v16 = vsel %vm311_vm0, %v325_v14, 0.0  ;;  %v328_v17 = vsel %vm311_vm0, %v326_v15, 0.0  ;;  %s413_s24 = sshll.u32 %s284_s14, 4  ;;  %s383_s11 = scalar_lea.sflag [#allocation5], %s867_s12  ;;  %s914_s24 = int_to_ptr.vmem [resolvable:$true] %s413_s24 }
  0x3e   : > { %v329_v18 = vadd.f32 %v328_v17, %v327_v16  ;;  %s683_s13 = scalar_lea.vmem %s914_s24, 16  ;;  %s768_s16 = smov [#allocation4]  }
  0x3f   : > { %p684_p2 = scmp.ne.s32.totalorder %s914_s24, %s683_s13  ;;  %s687_s17 = sshll.u32 %s768_s16, 4  ;;  %s688_s17 = int_to_ptr.vmem [resolvable:$false] %s687_s17 }
  0x40   : > { %v330_v19 = vrot.slane %v329_v18, 4  ;;  %s689_s29 = scalar_lea.vmem %s688_s17, 32  ;;  %p690_p6 = scmp.lt.s32.totalorder %s914_s24, %s688_s17 }
  0x41   : > { %p685_p3 = pnand %p684_p2, %p839_p4  ;;  %p691_p7 = scmp.lt.s32.totalorder %s689_s29, %s683_s13 }
  0x42   : > { %v331_v20 = vadd.f32 %v330_v19, %v329_v18 }
  0x43   : > { %p686_p5 = pneg %p685_p3  ;;  %p692_p9 = por %p691_p7, %p690_p6 }
  0x44   : > { %v332_v21 = vrot.slane %v331_v20, 2 }
  0x45   : > { %p693_p10 = pnand %p692_p9, %p686_p5 }
  0x46   : > { %v333_v22 = vadd.f32 %v332_v21, %v331_v20 }
  0x48   : > { %v334_v23 = vrot.slane %v333_v22, 1 }
  0x4a   : > { %v335_v24 = vadd.f32 %v334_v23, %v333_v22 }
  0x4c   : > { %v336_v25 = vmul.f32 0.0625, %v335_v24 }
  0x4e   : > { %v337_v26 = vadd.f32 1e-05, %v336_v25 }
  0x50   : > { %651 = vrsqrt.f32 %v337_v26  ;;  %vm340_vm2 = vcmp.eq.f32.partialorder %v337_v26, inf  ;;  %v343_v28 = vand.u32 2147483648, %v337_v26  ;;  %vm342_vm3 = vcmp.eq.f32.partialorder %v337_v26, 0.0 }
  0x5a   : > { %v652_v27 = vpop.eup %651 }
  0x5b   : > { %v339_v29 = vmul.f32 %v652_v27, %v337_v26 }
  0x5d   : > { %v341_v30 = vsel %vm340_vm2, %v337_v26, %v339_v29 }
  0x5e   : > { %v344_v31 = vsel %vm342_vm3, %v343_v28, %v341_v30 }
  0x5f   : > { %653 = vrcp.f32 %v344_v31  ;;  %369 = vst.msk [vmem:[%s284_s14] sm:$0x1] %vm367_vm1, %v344_v31 }
  0x60   : > { %696 = shalt.err (!%p693_p10)
}
  0x61   : > { %s697_s21 = scalar_lea.hbm %s921_s10, 16  ;;  %s701_s9 = scalar_lea.hbm %s988_s5, 32 }
  0x62   : > { %p698_p11 = scmp.ne.s32.totalorder %s921_s10, %s697_s21  ;;  %p702_p0 = scmp.lt.u32.totalorder %s921_s10, %s988_s5 }
  0x63   : > { %p703_p1 = scmp.lt.u32.totalorder %s701_s9, %s697_s21  ;;  %p705_p3 = scmp.lt.u32.totalorder %s697_s21, %s921_s10 }
  0x64   : > { %p699_p12 = pnand %p698_p11, %p839_p4 }
  0x65   : > { %p704_p2 = por %p703_p1, %p702_p0 }
  0x66   : > { %p700_p13 = pneg %p699_p12 }
  0x67   : > { %p706_p5 = por %p705_p3, %p704_p2 }
  0x69   : > { %p707_p6 = pnand %p706_p5, %p700_p13 }
  0x6b   : > { %710 = shalt.err (!%p707_p6)
}
  0x6c   : > { %592 = dma.vmem_to_hbm [thread:$0]  (%p839_p4), %s914_s24, 16, %s921_s10, %s383_s11   ;;  %v654_v32 = vpop.eup %653  ;;  %v583_v33 = vld [vmem:[%s984_s1] ss:$0 sm:$0xff] }
  0x6d   : > { %v347_v34 = vmul.f32 %v654_v32, %v880_v12  ;;  %v348_v35 = vmul.f32 %v654_v32, %v882_v13  ;;  %v584_v36 = vld [vmem:[%s985_s2] ss:$0 sm:$0xff]  ;;  %s306_s24 = scalar_lea.vmem %s986_s3, %s589_s8 }
  0x6f   : > { %v355_v37 = vmul.f32 %v583_v33, %v347_v34  ;;  %v356_v38 = vmul.f32 %v583_v33, %v348_v35 }
  0x71   : > { %v363_v39 = vadd.f32 %v584_v36, %v355_v37  ;;  %v364_v40 = vadd.f32 %v584_v36, %v356_v38 }
  0x73   : > { %365 = vst.msk [vmem:[%s306_s24] sm:$0xff] %vm311_vm0, %v363_v39  ;;  %366 = vst.msk [vmem:[%s306_s24 + $0x8] sm:$0xff] %vm311_vm0, %v364_v40 }
  0x74 PF: > { %p602_p4 = scmp.ge.s32.totalorder %s765_s23, 2  ;;  %s436_s10 = sand.u32 1, %s745_s18  }
  0x75   : > { %s437_s11 = scalar_lea.sflag [#allocation3], %s436_s10 }
  0x76   : > { %p596_p7 = pnand %p602_p4, %p846_p8 }
  0x78   : > { %736 = dma.done.wait (!%p596_p7), %s437_s11, 16  }
  0x79   : > { %738 = vsyncadd (!%p596_p7), %s437_s11, 4294967280  ;;  %s445_s7 = scalar_lea.sflag [#allocation5], %s436_s10 }
  0x7a   : > { %740 = dma.done.wait (!%p596_p7), %s445_s7, 16  }
  0x7b   : > { %742 = vsyncadd (!%p596_p7), %s445_s7, 4294967280  ;;  %s22_s23 = sadd.s32 1, %s765_s23   ;;  %s991_s18 = smov %s749_s19 }
  0x7c   : > { %p19_p9 = scmp.ge.s32.totalorder %s22_s23, 4   ;;  %s992_s19 = smov %s753_s20 }
  0x7d   : > { %s993_s20 = smov %s852_s6  ;;  %s994_s21 = smov %s761_s22 }
  0x7e   : > { %s995_s22 = smov %s997_s26  ;;  %21 = sbr.rel (!%p19_p9) target bundleno = 6 (0x6), region = 102 }
  0x85   :  { %449 = vsyncpa [#allocation3], 1 }
  0x86   :  { %451 = vsyncpa [#allocation3 + $0x1], 1 }
  0x87   :  { %452 = vsyncpa [#allocation5], 1 }
  0x88   :  { %454 = vsyncpa [#allocation5 + $0x1], 1 }

</bundles_post_ra>
